<compile_context>
chip_gen: v7x
topology: tpu7x:2x2x1
jax: 0.10.0
libtpu: 0.0.40
codegen_flags: <defaults>
</compile_context>

<pallas_src>
import functools

import jax
import jax.numpy as jnp
from jax.experimental import pallas as pl
from jax.experimental.pallas import tpu as pltpu


def _triplet_kernel(a_ref, p_ref, n_ref, loss_ref, pct_ref, *,
                    margin, eps, total_b, steps_per_split, needs_mask):
    split = pl.program_id(0)   # "parallel" axis: TC shard (partial-sum slot)
    step = pl.program_id(1)    # "arbitrary" axis: streamed batch tiles
    tb = a_ref.shape[0]        # rows in this batch tile

    # Init this core's resident (1, 1) partial accumulators on its first step.
    @pl.when(step == 0)
    def _init():
        loss_ref[...] = jnp.zeros_like(loss_ref)
        pct_ref[...] = jnp.zeros_like(pct_ref)

    # Upcast per tile (inputs may be bf16; all math in f32).
    # TODO(synk): optional bf16 VALU products (f32-accumulated reductions) for v6e/v7x
    # would halve vreg traffic at a small numerics cost; kept in f32 for fidelity.
    a = a_ref[...].astype(jnp.float32)
    p = p_ref[...].astype(jnp.float32)
    n = n_ref[...].astype(jnp.float32)

    # Row-wise dot products and squared norms (keepdims -> (TB, 1), stays 2-D).
    dot_ap = jnp.sum(a * p, axis=1, keepdims=True)
    dot_an = jnp.sum(a * n, axis=1, keepdims=True)
    sq_a = jnp.sum(a * a, axis=1, keepdims=True)
    sq_p = jnp.sum(p * p, axis=1, keepdims=True)
    sq_n = jnp.sum(n * n, axis=1, keepdims=True)

    # nn.CosineSimilarity(dim=1, eps): x1.x2 / max(||x1|| * ||x2||, eps).
    # Faithful norm-product form (no sq*sq overflow; exact eps clamp semantics).
    # These are per-row (TB, 1) columns, so the sqrt/divide cost is negligible.
    eps_f = jnp.float32(eps)
    norm_a = jnp.sqrt(sq_a)
    cos_ap = dot_ap / jnp.maximum(norm_a * jnp.sqrt(sq_p), eps_f)
    cos_an = dot_an / jnp.maximum(norm_a * jnp.sqrt(sq_n), eps_f)

    # losses = relu(-cos_ap - (-cos_an) + margin)
    losses = jnp.maximum(-cos_ap + cos_an + jnp.float32(margin), 0.0)  # (TB, 1)

    if needs_mask:
        # Mask padded rows (ragged last tile) and whole padding tiles that exist
        # only to even out the core split (their block index is clamped in the
        # index_map, so the data read is valid but must contribute nothing).
        tile_idx = split * steps_per_split + step
        row = jax.lax.broadcasted_iota(jnp.int32, (tb, 1), 0)
        valid = (tile_idx * tb + row) < total_b
        losses = jnp.where(valid, losses, 0.0)

    loss_ref[...] += jnp.sum(losses, keepdims=True)
    pct_ref[...] += jnp.sum((losses > 0.0).astype(jnp.float32), keepdims=True)


def triplet_loss(anchor, positive, negative, margin=0.4, eps=1e-6,
                 block_rows=None, input_buffers=2):
    """Returns (loss, percent_activated) as f32 scalars, cosine distance_type."""
    assert anchor.shape == positive.shape == negative.shape
    assert anchor.ndim == 2
    B, D = anchor.shape
    itemsize = jnp.dtype(anchor.dtype).itemsize

    # Row alignment must respect the packed sublane tile of the input dtype.
    if itemsize >= 4:
        align = 8
    elif itemsize == 2:
        align = 16
    else:
        align = 32

    # Generation-aware VMEM budget: ~3/4 of physical capacity
    # (~48 MiB on v7x's 64 MiB, ~96 MiB on v5e/v6e's 128 MiB).
    try:
        vmem_cap = int(pltpu.get_tpu_info().vmem_capacity_bytes)
    except Exception:
        vmem_cap = 64 << 20  # conservative v7x fallback
    vmem_budget = max((vmem_cap * 3) // 4, 32 << 20)

    bufcount = max(int(input_buffers), 2)

    if block_rows is not None:
        tb = int(block_rows)
        if tb < B:
            assert tb % align == 0, f"block_rows must be a multiple of {align}"
        else:
            tb = B
    else:
        # Target ~4 MiB per (tb, D) input block, floor 512 rows, capped so the
        # double(/triple)-buffered working set + f32 intermediates fit the budget.
        target_block_bytes = 4 << 20
        tb = max(512, target_block_bytes // max(D * itemsize, 1))
        bytes_per_row = D * (3 * bufcount * itemsize + 6 * 4)
        tb = min(tb, max(vmem_budget // bytes_per_row, align))
        tb = max((tb // align) * align, align)
        if B <= tb:
            tb = B  # single full-batch block; block dim equals full array dim

    n_tiles = pl.cdiv(B, tb)
    num_splits = 2 if n_tiles >= 2 else 1          # shard tiles across TCs on v7x
    spc = pl.cdiv(n_tiles, num_splits)             # steps per split
    needs_mask = (num_splits * spc * tb) != B      # ragged rows or padding tiles
    last_tile = n_tiles - 1

    def in_map(c, s):
        # Clamp padding tiles (c*spc + s >= n_tiles) to a valid block; the kernel
        # masks their contribution out entirely.
        return (jnp.minimum(c * spc + s, last_tile), 0)

    in_block = (tb, D)
    if bufcount > 2:
        in_spec = pl.BlockSpec(in_block, in_map, pipeline_mode=pl.Buffered(bufcount))
    else:
        in_spec = pl.BlockSpec(in_block, in_map)

    kernel = functools.partial(
        _triplet_kernel, margin=float(margin), eps=float(eps),
        total_b=int(B), steps_per_split=int(spc), needs_mask=bool(needs_mask))

    cost = pl.CostEstimate(
        flops=10 * B * D,                      # 5 products + 5 reduce-adds per element
        transcendentals=3 * B,                 # per-row sqrt of the three norms
        bytes_accessed=3 * B * D * itemsize + 8 * num_splits)

    loss_parts, pct_parts = pl.pallas_call(
        kernel,
        out_shape=(
            jax.ShapeDtypeStruct((num_splits, 1), jnp.float32),
            jax.ShapeDtypeStruct((num_splits, 1), jnp.float32),
        ),
        grid=(num_splits, spc),
        in_specs=[in_spec, in_spec, in_spec],
        out_specs=(
            pl.BlockSpec((1, 1), lambda c, s: (c, 0)),
            pl.BlockSpec((1, 1), lambda c, s: (c, 0)),
        ),
        compiler_params=pltpu.CompilerParams(
            dimension_semantics=("parallel", "arbitrary"),
            vmem_limit_bytes=int(vmem_budget),
        ),
        cost_estimate=cost,
    )(anchor, positive, negative)

    # Finalize in the wrapper: add per-core partials, divide by TRUE batch size.
    inv_b = jnp.float32(1.0 / B)
    loss = jnp.sum(loss_parts) * inv_b          # losses.mean()
    pct = jnp.sum(pct_parts) * inv_b            # percent_activated
    # TODO(synk): PyTorch returns percent_activated as a host-side Python float;
    # here it is a traced f32 scalar.
    return loss, pct


if __name__ == "__main__":
    # Pure-JAX reference (same math, outside the kernel).
    def ref(a, p, n, margin=0.4, eps=1e-6):
        def cos(x, y):
            num = jnp.sum(x * y, axis=1)
            den = jnp.maximum(
                jnp.linalg.norm(x, axis=1) * jnp.linalg.norm(y, axis=1), eps
            )
            return num / den

        losses = jax.nn.relu(-cos(a, p) + cos(a, n) + margin)
        return losses.mean(), jnp.mean((losses > 0).astype(jnp.float32))

    D = 32

    # Case 1: small batch, single tile, adaptive tb (batch=8, hidden=32).
    B = 8
    ka, kp, kn = jax.random.split(jax.random.PRNGKey(0), 3)
    anchor = jax.random.normal(ka, (B, D), dtype=jnp.float32)
    positive = jax.random.normal(kp, (B, D), dtype=jnp.float32)
    negative = jax.random.normal(kn, (B, D), dtype=jnp.float32)

    loss, pct = triplet_loss(anchor, positive, negative, margin=0.4)
    jax.block_until_ready((loss, pct))
    rl, rp = ref(anchor, positive, negative)
    assert jnp.allclose(loss, rl, atol=1e-5), (loss, rl)
    assert jnp.allclose(pct, rp, atol=1e-6), (pct, rp)

    # Case 2: ragged multi-tile, dual-split grid with clamped padding tile
    # (B=20, tb=8 -> 3 real tiles, grid (2, 2)).
    B2 = 20
    k2a, k2p, k2n = jax.random.split(jax.random.PRNGKey(1), 3)
    a2 = jax.random.normal(k2a, (B2, D), dtype=jnp.float32)
    p2 = jax.random.normal(k2p, (B2, D), dtype=jnp.float32)
    n2 = jax.random.normal(k2n, (B2, D), dtype=jnp.float32)
    loss2, pct2 = triplet_loss(a2, p2, n2, margin=0.4, block_rows=8)
    jax.block_until_ready((loss2, pct2))
    rl2, rp2 = ref(a2, p2, n2)
    assert jnp.allclose(loss2, rl2, atol=1e-5), (loss2, rl2)
    assert jnp.allclose(pct2, rp2, atol=1e-6), (pct2, rp2)

    # Case 3: aligned multi-tile, dual split, no ragged mask emitted
    # (B=32, tb=8 -> 4 tiles, grid (2, 2), needs_mask=False).
    B3 = 32
    k3a, k3p, k3n = jax.random.split(jax.random.PRNGKey(2), 3)
    a3 = jax.random.normal(k3a, (B3, D), dtype=jnp.float32)
    p3 = jax.random.normal(k3p, (B3, D), dtype=jnp.float32)
    n3 = jax.random.normal(k3n, (B3, D), dtype=jnp.float32)
    loss3, pct3 = triplet_loss(a3, p3, n3, margin=0.4, block_rows=8)
    jax.block_until_ready((loss3, pct3))
    rl3, rp3 = ref(a3, p3, n3)
    assert jnp.allclose(loss3, rl3, atol=1e-5), (loss3, rl3)
    assert jnp.allclose(pct3, rp3, atol=1e-6), (pct3, rp3)

    # Case 4: bf16 embeddings, packed-aligned 16-row tiles (upcast per tile in-kernel).
    a_bf = a2.astype(jnp.bfloat16)
    p_bf = p2.astype(jnp.bfloat16)
    n_bf = n2.astype(jnp.bfloat16)
    loss4, pct4 = triplet_loss(a_bf, p_bf, n_bf, margin=0.4, block_rows=16)
    jax.block_until_ready((loss4, pct4))
    rl4, _ = ref(
        a_bf.astype(jnp.float32), p_bf.astype(jnp.float32), n_bf.astype(jnp.float32)
    )
    assert jnp.allclose(loss4, rl4, atol=1e-4), (loss4, rl4)

    print("KERNEL_OK")
</pallas_src>

<mosaic_0001>
module attributes {stable_mosaic.version = 11 : i64} {
  func.func @_triplet_kernel(%arg0: i32, %arg1: i32, %arg2: memref<8x32xf32, #tpu.memory_space<vmem>>, %arg3: memref<8x32xf32, #tpu.memory_space<vmem>>, %arg4: memref<8x32xf32, #tpu.memory_space<vmem>>, %arg5: memref<1x1xf32, #tpu.memory_space<vmem>>, %arg6: memref<1x1xf32, #tpu.memory_space<vmem>>) attributes {dimension_semantics = [#tpu.dimension_semantics<parallel>, #tpu.dimension_semantics<arbitrary>], iteration_bounds = array<i64: 1, 1>, scalar_prefetch = 0 : i64, scratch_operands = 0 : i64, tpu.core_type = #tpu.core_type<tc>, window_params = [{transform_indices = @transform_0, window_bounds = array<i64: 8, 32>}, {transform_indices = @transform_1, window_bounds = array<i64: 8, 32>}, {transform_indices = @transform_2, window_bounds = array<i64: 8, 32>}, {transform_indices = @transform_3, window_bounds = array<i64: 1, 1>}, {transform_indices = @transform_4, window_bounds = array<i64: 1, 1>}]} {
    %c0_i32 = arith.constant 0 : i32
    %0 = arith.cmpi eq, %arg1, %c0_i32 : i32
    %1 = arith.extui %0 : i1 to i32
    %c0_i32_0 = arith.constant 0 : i32
    %2 = arith.cmpi ne, %1, %c0_i32_0 : i32
    scf.if %2 {
      %cst_26 = arith.constant 0.000000e+00 : f32
      %59 = vector.broadcast %cst_26 : f32 to vector<1x1xf32>
      %c0_27 = arith.constant 0 : index
      %c0_28 = arith.constant 0 : index
      %60 = vector.load %arg5[%c0_27, %c0_28] : memref<1x1xf32, #tpu.memory_space<vmem>>, vector<1x1xf32>
      tpu.vector_store %arg5[%c0_27, %c0_28], %59 {strides = array<i32>} : memref<1x1xf32, #tpu.memory_space<vmem>>, vector<1x1xf32>,
      %cst_29 = arith.constant 0.000000e+00 : f32
      %61 = vector.broadcast %cst_29 : f32 to vector<1x1xf32>
      %c0_30 = arith.constant 0 : index
      %c0_31 = arith.constant 0 : index
      %62 = vector.load %arg6[%c0_30, %c0_31] : memref<1x1xf32, #tpu.memory_space<vmem>>, vector<1x1xf32>
      tpu.vector_store %arg6[%c0_30, %c0_31], %61 {strides = array<i32>} : memref<1x1xf32, #tpu.memory_space<vmem>>, vector<1x1xf32>,
    } else {
    }
    %c0 = arith.constant 0 : index
    %c0_1 = arith.constant 0 : index
    %3 = vector.load %arg2[%c0, %c0_1] : memref<8x32xf32, #tpu.memory_space<vmem>>, vector<8x32xf32>
    %c0_2 = arith.constant 0 : index
    %c0_3 = arith.constant 0 : index
    %4 = vector.load %arg3[%c0_2, %c0_3] : memref<8x32xf32, #tpu.memory_space<vmem>>, vector<8x32xf32>
    %c0_4 = arith.constant 0 : index
    %c0_5 = arith.constant 0 : index
    %5 = vector.load %arg4[%c0_4, %c0_5] : memref<8x32xf32, #tpu.memory_space<vmem>>, vector<8x32xf32>
    %6 = arith.mulf %3, %4 : vector<8x32xf32>
    %cst = arith.constant dense<0.000000e+00> : vector<8xf32>
    %7 = vector.multi_reduction <add>, %6, %cst [1] : vector<8x32xf32> to vector<8xf32>
    %8 = vector.shape_cast %7 : vector<8xf32> to vector<8x1xf32>
    %9 = arith.mulf %3, %5 : vector<8x32xf32>
    %cst_6 = arith.constant dense<0.000000e+00> : vector<8xf32>
    %10 = vector.multi_reduction <add>, %9, %cst_6 [1] : vector<8x32xf32> to vector<8xf32>
    %11 = vector.shape_cast %10 : vector<8xf32> to vector<8x1xf32>
    %12 = arith.mulf %3, %3 : vector<8x32xf32>
    %cst_7 = arith.constant dense<0.000000e+00> : vector<8xf32>
    %13 = vector.multi_reduction <add>, %12, %cst_7 [1] : vector<8x32xf32> to vector<8xf32>
    %14 = vector.shape_cast %13 : vector<8xf32> to vector<8x1xf32>
    %15 = arith.mulf %4, %4 : vector<8x32xf32>
    %cst_8 = arith.constant dense<0.000000e+00> : vector<8xf32>
    %16 = vector.multi_reduction <add>, %15, %cst_8 [1] : vector<8x32xf32> to vector<8xf32>
    %17 = vector.shape_cast %16 : vector<8xf32> to vector<8x1xf32>
    %18 = arith.mulf %5, %5 : vector<8x32xf32>
    %cst_9 = arith.constant dense<0.000000e+00> : vector<8xf32>
    %19 = vector.multi_reduction <add>, %18, %cst_9 [1] : vector<8x32xf32> to vector<8xf32>
    %20 = vector.shape_cast %19 : vector<8xf32> to vector<8x1xf32>
    %21 = math.sqrt %14 : vector<8x1xf32>
    %22 = math.sqrt %17 : vector<8x1xf32>
    %23 = arith.mulf %21, %22 : vector<8x1xf32>
    %cst_10 = arith.constant 9.99999997E-7 : f32
    %24 = vector.broadcast %cst_10 : f32 to vector<8x1xf32>
    %25 = arith.maximumf %23, %24 : vector<8x1xf32>
    %26 = arith.divf %8, %25 : vector<8x1xf32>
    %27 = math.sqrt %20 : vector<8x1xf32>
    %28 = arith.mulf %21, %27 : vector<8x1xf32>
    %cst_11 = arith.constant 9.99999997E-7 : f32
    %29 = vector.broadcast %cst_11 : f32 to vector<8x1xf32>
    %30 = arith.maximumf %28, %29 : vector<8x1xf32>
    %31 = arith.divf %11, %30 : vector<8x1xf32>
    %cst_12 = arith.constant 0.000000e+00 : f32
    %32 = vector.broadcast %cst_12 : f32 to vector<8x1xf32>
    %33 = arith.subf %32, %26 : vector<8x1xf32>
    %34 = arith.addf %33, %31 : vector<8x1xf32>
    %cst_13 = arith.constant 4.000000e-01 : f32
    %35 = vector.broadcast %cst_13 : f32 to vector<8x1xf32>
    %36 = arith.addf %34, %35 : vector<8x1xf32>
    %cst_14 = arith.constant 0.000000e+00 : f32
    %37 = vector.broadcast %cst_14 : f32 to vector<8x1xf32>
    %38 = arith.maximumf %36, %37 : vector<8x1xf32>
    %c0_15 = arith.constant 0 : index
    %c0_16 = arith.constant 0 : index
    %39 = vector.load %arg5[%c0_15, %c0_16] : memref<1x1xf32, #tpu.memory_space<vmem>>, vector<1x1xf32>
    %40 = vector.shape_cast %38 : vector<8x1xf32> to vector<1x8x1xf32>
    %cst_17 = arith.constant dense<0.000000e+00> : vector<1xf32>
    %41 = vector.multi_reduction <add>, %40, %cst_17 [1, 2] : vector<1x8x1xf32> to vector<1xf32>
    %42 = vector.shape_cast %41 : vector<1xf32> to vector<1x1x1xf32>
    %43 = vector.extract %42[0, 0, 0] : f32 from vector<1x1x1xf32>
    %44 = vector.broadcast %43 : f32 to vector<1x1xf32>
    %45 = arith.addf %39, %44 : vector<1x1xf32>
    %c0_18 = arith.constant 0 : index
    %c0_19 = arith.constant 0 : index
    %46 = vector.load %arg5[%c0_18, %c0_19] : memref<1x1xf32, #tpu.memory_space<vmem>>, vector<1x1xf32>
    tpu.vector_store %arg5[%c0_18, %c0_19], %45 {strides = array<i32>} : memref<1x1xf32, #tpu.memory_space<vmem>>, vector<1x1xf32>,
    %c0_20 = arith.constant 0 : index
    %c0_21 = arith.constant 0 : index
    %47 = vector.load %arg6[%c0_20, %c0_21] : memref<1x1xf32, #tpu.memory_space<vmem>>, vector<1x1xf32>
    %cst_22 = arith.constant 0.000000e+00 : f32
    %48 = vector.broadcast %cst_22 : f32 to vector<8x1xf32>
    %49 = arith.cmpf ogt, %38, %48 : vector<8x1xf32>
    %50 = arith.extui %49 : vector<8x1xi1> to vector<8x1xi32>
    %51 = arith.sitofp %50 : vector<8x1xi32> to vector<8x1xf32>
    %52 = vector.shape_cast %51 : vector<8x1xf32> to vector<1x8x1xf32>
    %cst_23 = arith.constant dense<0.000000e+00> : vector<1xf32>
    %53 = vector.multi_reduction <add>, %52, %cst_23 [1, 2] : vector<1x8x1xf32> to vector<1xf32>
    %54 = vector.shape_cast %53 : vector<1xf32> to vector<1x1x1xf32>
    %55 = vector.extract %54[0, 0, 0] : f32 from vector<1x1x1xf32>
    %56 = vector.broadcast %55 : f32 to vector<1x1xf32>
    %57 = arith.addf %47, %56 : vector<1x1xf32>
    %c0_24 = arith.constant 0 : index
    %c0_25 = arith.constant 0 : index
    %58 = vector.load %arg6[%c0_24, %c0_25] : memref<1x1xf32, #tpu.memory_space<vmem>>, vector<1x1xf32>
    tpu.vector_store %arg6[%c0_24, %c0_25], %57 {strides = array<i32>} : memref<1x1xf32, #tpu.memory_space<vmem>>, vector<1x1xf32>,
    return
  }
  func.func @transform_0(%arg0: i32, %arg1: i32) -> (i32, i32) {
    %c1_i32 = arith.constant 1 : i32
    %0 = arith.muli %arg0, %c1_i32 : i32
    %1 = arith.addi %0, %arg1 : i32
    %c0_i32 = arith.constant 0 : i32
    %2 = arith.minsi %1, %c0_i32 : i32
    %c0_i32_0 = arith.constant 0 : i32
    %c0_i32_1 = arith.constant 0 : i32
    return %2, %c0_i32_0 : i32, i32
  }
  func.func @transform_1(%arg0: i32, %arg1: i32) -> (i32, i32) {
    %c1_i32 = arith.constant 1 : i32
    %0 = arith.muli %arg0, %c1_i32 : i32
    %1 = arith.addi %0, %arg1 : i32
    %c0_i32 = arith.constant 0 : i32
    %2 = arith.minsi %1, %c0_i32 : i32
    %c0_i32_0 = arith.constant 0 : i32
    %c0_i32_1 = arith.constant 0 : i32
    return %2, %c0_i32_0 : i32, i32
  }
  func.func @transform_2(%arg0: i32, %arg1: i32) -> (i32, i32) {
    %c1_i32 = arith.constant 1 : i32
    %0 = arith.muli %arg0, %c1_i32 : i32
    %1 = arith.addi %0, %arg1 : i32
    %c0_i32 = arith.constant 0 : i32
    %2 = arith.minsi %1, %c0_i32 : i32
    %c0_i32_0 = arith.constant 0 : i32
    %c0_i32_1 = arith.constant 0 : i32
    return %2, %c0_i32_0 : i32, i32
  }
  func.func @transform_3(%arg0: i32, %arg1: i32) -> (i32, i32) {
    %c0_i32 = arith.constant 0 : i32
    %c0_i32_0 = arith.constant 0 : i32
    return %arg0, %c0_i32 : i32, i32
  }
  func.func @transform_4(%arg0: i32, %arg1: i32) -> (i32, i32) {
    %c0_i32 = arith.constant 0 : i32
    %c0_i32_0 = arith.constant 0 : i32
    return %arg0, %c0_i32 : i32, i32
  }
}

</mosaic_0001>

<bundles_post_ra>
// kernel: tpu_custom_call.1
= control target key start
LH: loop header
LB: loop body
LE: loop exit
PB: predicated region body
PF: predicated region fallthrough
CT: control target
= control target key end

     0   :  { %10 = vsyncpa [#allocation3], 0  ;;  %s457_s0 = inlined_call_operand.hbm [shape: f32[8,32], index: 0, kind: input, shape index: {}]   ;;  %s458_s1 = inlined_call_operand.hbm [shape: f32[8,32], index: 1, kind: input, shape index: {}]   ;;  %s459_s2 = inlined_call_operand.hbm [shape: f32[8,32], index: 2, kind: input, shape index: {}]   ;;  %s460_s3 = inlined_call_operand.hbm [shape: f32[1,1], index: 3, kind: output, shape index: {0}]   ;;  %s461_s4 = inlined_call_operand.hbm [shape: f32[1,1], index: 4, kind: output, shape index: {1}]  }
   0x1   :  { %11 = vsyncpa [#allocation6], 0 }
   0x2   :  { %12 = vsyncpa [#allocation4], 0 }
   0x3   :  { %13 = vsyncpa [#allocation10], 0  ;;  %s349_s15 = smov [#allocation5]   ;;  %s350_s17 = smov [#allocation2]  }
   0x4   :  { %s40_s16 = sshll.u32 %s349_s15, 4  ;;  %s25_s18 = sshll.u32 %s350_s17, 4  ;;  %s41_s16 = int_to_ptr.vmem [resolvable:$true] %s40_s16  ;;  %s26_s18 = int_to_ptr.vmem [resolvable:$true] %s25_s18 }
   0x5   :  { %s231_s21 = scalar_lea.hbm %s458_s1, 128 }
   0x6   :  { %p232_p0 = scmp.ne.s32.totalorder %s458_s1, %s231_s21  ;;  %p235_p1 = scmp.lt.u32.totalorder %s231_s21, %s458_s1 }
   0x8   :  { %p237_p2 = pnand %p235_p1, %p232_p0 }
   0xa   :  { %240 = shalt.err (!%p237_p2)
}
   0xb   :  { %s241_s26 = scalar_lea.vmem %s41_s16, 128  ;;  %p246_p4 = scmp.lt.s32.totalorder %s41_s16, %s41_s16 }
   0xc   :  { %p242_p3 = scmp.ne.s32.totalorder %s41_s16, %s241_s26  ;;  %p247_p5 = scmp.lt.s32.totalorder %s241_s26, %s241_s26 }
   0xe   :  { %p248_p6 = por %p247_p5, %p246_p4 }
  0x10   :  { %p249_p7 = pnand %p248_p6, %p242_p3 }
  0x12   :  { %252 = shalt.err (!%p249_p7)
}
  0x13   :  { %43 = dma.hbm_to_vmem [thread:$0]  %s458_s1, 128, %s41_s16, [#allocation6]  }
  0x14   :  { %s253_s5 = scalar_lea.hbm %s457_s0, 128 }
  0x15   :  { %p254_p8 = scmp.ne.s32.totalorder %s457_s0, %s253_s5  ;;  %p257_p9 = scmp.lt.u32.totalorder %s253_s5, %s457_s0 }
  0x17   :  { %p259_p10 = pnand %p257_p9, %p254_p8 }
  0x19   :  { %262 = shalt.err (!%p259_p10)
}
  0x1a   :  { %s263_s10 = scalar_lea.vmem %s26_s18, 128  ;;  %p268_p12 = scmp.lt.s32.totalorder %s26_s18, %s26_s18 }
  0x1b   :  { %p264_p11 = scmp.ne.s32.totalorder %s26_s18, %s263_s10  ;;  %p269_p13 = scmp.lt.s32.totalorder %s263_s10, %s263_s10 }
  0x1d   :  { %p270_p0 = por %p269_p13, %p268_p12 }
  0x1f   :  { %p271_p1 = pnand %p270_p0, %p264_p11 }
  0x21   :  { %274 = shalt.err (!%p271_p1)
}
  0x22   :  { %28 = dma.hbm_to_vmem [thread:$0]  %s457_s0, 128, %s26_s18, [#allocation3]  }
  0x23   :  { %s351_s12 = smov [#allocation7]   ;;  %s275_s16 = scalar_lea.hbm %s459_s2, 128 }
  0x24   :  { %s55_s13 = sshll.u32 %s351_s12, 4  ;;  %p276_p2 = scmp.ne.s32.totalorder %s459_s2, %s275_s16  ;;  %s56_s13 = int_to_ptr.vmem [resolvable:$true] %s55_s13 }
  0x25   :  { %p279_p3 = scmp.lt.u32.totalorder %s275_s16, %s459_s2 }
  0x27   :  { %p281_p4 = pnand %p279_p3, %p276_p2 }
  0x29   :  { %284 = shalt.err (!%p281_p4)
}
  0x2a   :  { %s285_s22 = scalar_lea.vmem %s56_s13, 128  ;;  %p290_p6 = scmp.lt.s32.totalorder %s56_s13, %s56_s13 }
  0x2b   :  { %p286_p5 = scmp.ne.s32.totalorder %s56_s13, %s285_s22  ;;  %p291_p7 = scmp.lt.s32.totalorder %s285_s22, %s285_s22 }
  0x2d   :  { %p292_p8 = por %p291_p7, %p290_p6 }
  0x2f   :  { %p293_p9 = pnand %p292_p8, %p286_p5 }
  0x31   :  { %296 = shalt.err (!%p293_p9)
}
  0x32   :  { %58 = dma.hbm_to_vmem [thread:$0]  %s459_s2, 128, %s56_s13, [#allocation6]  }
  0x33   :  { %341 = dma.done.wait [#allocation3], 128  }
  0x34   :  { %342 = vsyncadd [#allocation3], 4294967168 }
  0x35   :  { %343 = dma.done.wait [#allocation6], 256  }
  0x36   :  { %344 = vsyncadd [#allocation6], 4294967040  ;;  %v86_v0 = vld [vmem:[#allocation7] sm:$0xff]  ;;  %vm88_vm0 = vcmask 261120   ;;  %v84_v1 = vld [vmem:[#allocation2] sm:$0xff]  ;;  %vm81_vm1 = vcmask 0  }
  0x37   :  { %v85_v2 = vld [vmem:[#allocation5] sm:$0xff]  ;;  %v104_v3 = vmul.f32 %v86_v0, %v86_v0  ;;  %v96_v4 = vmul.f32 %v84_v1, %v84_v1  ;;  %v92_v10 = vmul.f32 %v86_v0, %v84_v1  ;;  %v352_v13 = vmov 0.0   ;;  %s353_s2 = smov [#allocation8]   ;;  %s354_s25 = smov [#allocation9]  }
  0x38   :  { %v100_v5 = vmul.f32 %v85_v2, %v85_v2  ;;  %v87_v6 = vmul.f32 %v85_v2, %v84_v1  ;;  %82 = vst.msk [vmem:[#allocation8] sm:$0x1] %vm81_vm1, %v352_v13  ;;  %83 = vst.msk [vmem:[#allocation9] sm:$0x1] %vm81_vm1, %v352_v13  ;;  %vm142_vm8 = vcmask 7168   ;;  %s180_s23 = sshll.u32 %s353_s2, 4  ;;  %s181_s23 = int_to_ptr.vmem [resolvable:$true] %s180_s23 }
  0x39   :  { %v105_v7 = vsel %vm88_vm0, %v104_v3, 0.0  ;;  %v97_v8 = vsel %vm88_vm0, %v96_v4, 0.0  ;;  %v93_v12 = vsel %vm88_vm0, %v92_v10, 0.0  ;;  %s190_s26 = sshll.u32 %s354_s25, 4  ;;  %s297_s28 = scalar_lea.vmem %s181_s23, 16  ;;  %s424_s26 = int_to_ptr.vmem [resolvable:$true] %s190_s26 }
  0x3a   :  { %106 = vadd.xlane.f32.xlu1 %v105_v7  ;;  %98 = vadd.xlane.f32.xlu0 %v97_v8  ;;  %v101_v9 = vsel %vm88_vm0, %v100_v5, 0.0  ;;  %v89_v11 = vsel %vm88_vm0, %v87_v6, 0.0  ;;  %p298_p10 = scmp.ne.s32.totalorder %s181_s23, %s297_s28  ;;  %s301_s29 = scalar_lea.vmem %s181_s23, 32 }
  0x3b   :  { %p302_p11 = scmp.lt.s32.totalorder %s181_s23, %s181_s23  ;;  %p303_p12 = scmp.lt.s32.totalorder %s301_s29, %s297_s28 }
  0x3d   :  { %p304_p13 = por %p303_p12, %p302_p11 }
  0x3e   :  { %102 = vadd.xlane.f32.xlu0 %v101_v9  ;;  %90 = vadd.xlane.f32.xlu1 %v89_v11 }
  0x3f   :  { %v141_v63 = vld [vmem:[#allocation8] sm:$0x1]  ;;  %v157_v1 = vld [vmem:[#allocation9] sm:$0x1]  ;;  %p305_p0 = pnand %p304_p13, %p298_p10 }
  0x42   :  { %94 = vadd.xlane.f32.xlu0 %v93_v12 }
  0xc7   :  { %v107_v14 = vpop.xlane.xlu1 %106  ;;  %v99_v15 = vpop.xlane.xlu0 %98 }
  0xc8   :  { %221 = vrsqrt.f32 %v107_v14  ;;  %vm128_vm2 = vcmp.eq.f32.partialorder %v107_v14, inf  ;;  %v131_v20 = vand.u32 2147483648, %v107_v14  ;;  %vm130_vm3 = vcmp.eq.f32.partialorder %v107_v14, 0.0 }
  0xc9   :  { %223 = vrsqrt.f32 %v99_v15  ;;  %vm110_vm4 = vcmp.eq.f32.partialorder %v99_v15, inf  ;;  %v113_v23 = vand.u32 2147483648, %v99_v15  ;;  %vm112_vm5 = vcmp.eq.f32.partialorder %v99_v15, 0.0 }
  0xcb   :  { %v103_v16 = vpop.xlane.xlu0 %102  ;;  %v91_v36 = vpop.xlane.xlu1 %90 }
  0xcc   :  { %225 = vrsqrt.f32 %v103_v16  ;;  %vm117_vm6 = vcmp.eq.f32.partialorder %v103_v16, inf  ;;  %v120_v29 = vand.u32 2147483648, %v103_v16  ;;  %vm119_vm7 = vcmp.eq.f32.partialorder %v103_v16, 0.0 }
  0xcf   :  { %v95_v39 = vpop.xlane.xlu0 %94 }
  0xd2   :  { %v222_v17 = vpop.eup %221 }
  0xd3   :  { %v224_v18 = vpop.eup %223  ;;  %v127_v19 = vmul.f32 %v222_v17, %v107_v14 }
  0xd4   :  { %v109_v21 = vmul.f32 %v224_v18, %v99_v15 }
  0xd5   :  { %v129_v22 = vsel %vm128_vm2, %v107_v14, %v127_v19 }
  0xd6   :  { %v226_v24 = vpop.eup %225  ;;  %v111_v25 = vsel %vm110_vm4, %v99_v15, %v109_v21  ;;  %v132_v26 = vsel %vm130_vm3, %v131_v20, %v129_v22 }
  0xd7   :  { %v116_v27 = vmul.f32 %v226_v24, %v103_v16  ;;  %v114_v28 = vsel %vm112_vm5, %v113_v23, %v111_v25 }
  0xd8   :  { %v133_v30 = vmul.f32 %v132_v26, %v114_v28 }
  0xd9   :  { %v118_v31 = vsel %vm117_vm6, %v103_v16, %v116_v27 }
  0xda   :  { %v134_v32 = vmax.f32 %v133_v30, 1e-06  ;;  %v121_v33 = vsel %vm119_vm7, %v120_v29, %v118_v31 }
  0xdb   :  { %v122_v34 = vmul.f32 %v121_v33, %v114_v28 }
  0xdc   :  { %227 = vrcp.f32 %v134_v32 }
  0xdd   :  { %v123_v35 = vmax.f32 %v122_v34, 1e-06 }
  0xdf   :  { %229 = vrcp.f32 %v123_v35 }
  0xe6   :  { %v228_v37 = vpop.eup %227 }
  0xe7   :  { %v136_v41 = vmul.f32 %v228_v37, %v95_v39 }
  0xe9   :  { %v230_v38 = vpop.eup %229 }
  0xea   :  { %v125_v40 = vmul.f32 %v230_v38, %v91_v36 }
  0xec   :  { %v137_v42 = vsub.f32 0.0, %v125_v40 }
  0xee   :  { %v138_v43 = vadd.f32 %v137_v42, %v136_v41 }
  0xf0   :  { %v139_v44 = vadd.f32 0.4, %v138_v43 }
  0xf2   :  { %v140_v45 = vmax.f32 %v139_v44, 0.0 }
  0xf4   :  { %v143_v46 = vsel %vm142_vm8, %v140_v45, 0.0  ;;  %vm158_vm9 = vcmp.gt.f32.partialorder %v140_v45, 0.0 }
  0xf5   :  { %144 = vadd.xlane.f32.xlu1 %v143_v46  ;;  %v210_v47 = vsel %vm158_vm9, 1.0, %v352_v13 }
  0xf6   :  { %v161_v48 = vsel %vm142_vm8, %v210_v47, 0.0 }
  0xf7   :  { %162 = vadd.xlane.f32.xlu0 %v161_v48 }
 0x182   :  { %v145_v49 = vpop.xlane.xlu1 %144 }
 0x183   :  { %v146_v50 = vrot.slane %v145_v49, 4 }
 0x184   :  { %v163_v51 = vpop.xlane.xlu0 %162 }
 0x185   :  { %v147_v52 = vadd.f32 %v146_v50, %v145_v49  ;;  %v164_v53 = vrot.slane %v163_v51, 4 }
 0x187   :  { %v148_v54 = vrot.slane %v147_v52, 2  ;;  %v165_v55 = vadd.f32 %v164_v53, %v163_v51 }
 0x189   :  { %v166_v56 = vrot.slane %v165_v55, 2  ;;  %v149_v57 = vadd.f32 %v148_v54, %v147_v52 }
 0x18b   :  { %v167_v58 = vadd.f32 %v166_v56, %v165_v55  ;;  %v150_v59 = vrot.slane %v149_v57, 1 }
 0x18d   :  { %v151_v60 = vadd.f32 %v150_v59, %v149_v57  ;;  %v168_v61 = vrot.slane %v167_v58, 1 }
 0x18f   :  { %211 = vpush %v151_v60  ;;  %v169_v62 = vadd.f32 %v168_v61, %v167_v58 }
 0x191   :  { %213 = vpush %v169_v62 }
 0x1c0   :  { %s212_s24 = spop %211 }
 0x1c1   :  { %v153_v0 = vstv %s212_s24 }
 0x1c2   :  { %v154_v2 = vadd.f32 %v153_v0, %v141_v63  ;;  %s214_s27 = spop %213 }
 0x1c3   :  { %v171_v3 = vstv %s214_s27 }
 0x1c4   :  { %156 = vst.msk [vmem:[#allocation8] sm:$0x1] %vm81_vm1, %v154_v2  ;;  %v172_v4 = vadd.f32 %v171_v3, %v157_v1 }
 0x1c5   :  { %308 = shalt.err (!%p305_p0)
}
 0x1c6   :  { %s309_s6 = scalar_lea.hbm %s460_s3, 16 }
 0x1c7   :  { %p310_p1 = scmp.ne.s32.totalorder %s460_s3, %s309_s6  ;;  %p313_p2 = scmp.lt.u32.totalorder %s309_s6, %s460_s3 }
 0x1c9   :  { %p315_p3 = pnand %p313_p2, %p310_p1 }
 0x1cb   :  { %318 = shalt.err (!%p315_p3)
}
 0x1cc   :  { %183 = dma.vmem_to_hbm [thread:$0]  %s181_s23, 16, %s460_s3, [#allocation4]   ;;  %173 = vst.msk [vmem:[#allocation9] sm:$0x1] %vm81_vm1, %v172_v4 }
 0x1cd   :  { %s319_s12 = scalar_lea.vmem %s424_s26, 16  ;;  %s323_s13 = scalar_lea.vmem %s424_s26, 32 }
 0x1ce   :  { %p320_p4 = scmp.ne.s32.totalorder %s424_s26, %s319_s12  ;;  %p324_p5 = scmp.lt.s32.totalorder %s424_s26, %s424_s26 }
 0x1cf   :  { %p325_p6 = scmp.lt.s32.totalorder %s323_s13, %s319_s12 }
 0x1d1   :  { %p326_p7 = por %p325_p6, %p324_p5 }
 0x1d3   :  { %p327_p8 = pnand %p326_p7, %p320_p4 }
 0x1d5   :  { %330 = shalt.err (!%p327_p8)
}
 0x1d6   :  { %s331_s16 = scalar_lea.hbm %s461_s4, 16 }
 0x1d7   :  { %p332_p9 = scmp.ne.s32.totalorder %s461_s4, %s331_s16  ;;  %p335_p10 = scmp.lt.u32.totalorder %s331_s16, %s461_s4 }
 0x1d9   :  { %p337_p11 = pnand %p335_p10, %p332_p9 }
 0x1db   :  { %340 = shalt.err (!%p337_p11)
}
 0x1dc   :  { %193 = dma.vmem_to_hbm [thread:$0]  %s424_s26, 16, %s461_s4, [#allocation10]  }
 0x1dd   :  { %345 = dma.done.wait [#allocation4], 16  }
 0x1de   :  { %346 = vsyncadd [#allocation4], 4294967280 }
 0x1df   :  { %347 = dma.done.wait [#allocation10], 16  }
 0x1e0   :  { %348 = vsyncadd [#allocation10], 4294967280 }
 0x1e1   :  { %200 = vsyncpa [#allocation3], 1 }
 0x1e2   :  { %201 = vsyncpa [#allocation6], 1 }
 0x1e3   :  { %202 = vsyncpa [#allocation4], 1 }
 0x1e4   :  { %203 = vsyncpa [#allocation10], 1 }

</bundles_post_ra>
